<compile_context>
chip_gen: v6e
topology: v6e:2x2x1
jax: 0.10.0
libtpu: 0.0.40
codegen_flags: <defaults>
</compile_context>

<pallas_src>
import math

import numpy as np
import jax
import jax.numpy as jnp
from jax.experimental import pallas as pl
from jax.experimental.pallas import tpu as pltpu


def _sinusoidal_kernel(x_ref, w_ref, phase_ref, o_ref):
    # x_ref:     (TILE_ROWS, LANE_COLS)        f32 positions
    # w_ref:     (LANE_COLS, LANE_COLS*dim)    f32 scatter-broadcast * freq
    # phase_ref: (1, LANE_COLS*dim)            f32 phase (0 for sin, pi/2 for cos)
    # o_ref:     (TILE_ROWS, LANE_COLS*dim)    f32 lane-dense flat embeddings
    prod = jnp.dot(
        x_ref[...], w_ref[...],
        preferred_element_type=jnp.float32,
        precision=jax.lax.Precision.HIGHEST,
    )
    o_ref[...] = jnp.sin(prod + phase_ref[...])


def _round_up(a: int, b: int) -> int:
    return (a + b - 1) // b * b


def _build_tables(dim: int, M: float, lane_cols: int):
    half = dim // 2
    k = np.arange(half, dtype=np.float64)
    freqs = np.exp(-(math.log(M) / half) * k).astype(np.float32)          # (half,)
    freq_full = np.concatenate([freqs, freqs])                            # (dim,)
    phase_full = np.concatenate(
        [np.zeros(half, np.float32), np.full(half, np.pi / 2.0, np.float32)]
    )                                                                     # (dim,)
    # W[c, c*dim + j] = freq_full[j]  -> one-hot column scatter folded with freq.
    w = np.zeros((lane_cols, lane_cols * dim), dtype=np.float32)
    for c in range(lane_cols):
        w[c, c * dim:(c + 1) * dim] = freq_full
    phase_row = np.tile(phase_full, lane_cols)[None, :]                   # (1, lane_cols*dim)
    return w, phase_row


# Largest row tile; 1024 rows * 512 lanes * 4 B = 2 MiB output tile
# (4 MiB double-buffered) -- near the measured HBM roofline knee.
_MAX_TILE_ROWS = 1024


def sinusoidal_pos_emb(x: jax.Array, dim: int = 16, M: float = 10000.0) -> jax.Array:
    """Pallas equivalent of SinusoidalPosEmb.forward for positions of any shape."""
    assert dim % 2 == 0, "SinusoidalPosEmb requires an even dim"
    orig_shape = tuple(x.shape)
    N = int(np.prod(orig_shape)) if orig_shape else 1
    x_flat = jnp.asarray(x, jnp.float32).reshape(-1)

    # lane_cols * dim must be a multiple of 128; target ~512 output lanes so the
    # scatter matmul (K = lane_cols) stays far below the HBM-write roofline.
    base = 128 // math.gcd(dim, 128)
    lane_cols = base * max(1, 512 // (base * dim))
    out_w = lane_cols * dim

    rows = max(1, -(-N // lane_cols))
    # Minimal step count, then minimal padding: tile = ceil(rows/steps), 8-aligned.
    num_steps = -(-rows // _MAX_TILE_ROWS)
    tile_rows = _round_up(-(-rows // num_steps), 8)
    rows_pad = tile_rows * num_steps

    n_pad = rows_pad * lane_cols
    if n_pad != N:
        x_flat = jnp.pad(x_flat, (0, n_pad - N))
    x2d = x_flat.reshape(rows_pad, lane_cols)

    w_np, phase_np = _build_tables(dim, float(M), lane_cols)
    w = jnp.asarray(w_np)
    phase = jnp.asarray(phase_np)

    cost = pl.CostEstimate(
        flops=2 * rows_pad * lane_cols * out_w + rows_pad * out_w,
        transcendentals=rows_pad * out_w,
        bytes_accessed=4 * (rows_pad * lane_cols + lane_cols * out_w + out_w
                            + rows_pad * out_w),
    )

    out2d = pl.pallas_call(
        _sinusoidal_kernel,
        out_shape=jax.ShapeDtypeStruct((rows_pad, out_w), jnp.float32),
        grid=(num_steps,),
        in_specs=[
            pl.BlockSpec((tile_rows, lane_cols), lambda i: (i, 0)),
            pl.BlockSpec((lane_cols, out_w), lambda i: (0, 0)),
            pl.BlockSpec((1, out_w), lambda i: (0, 0)),
        ],
        out_specs=pl.BlockSpec((tile_rows, out_w), lambda i: (i, 0)),
        compiler_params=pltpu.CompilerParams(
            dimension_semantics=("parallel",),
            vmem_limit_bytes=32 * 1024 * 1024,
        ),
        cost_estimate=cost,
    )(x2d, w, phase)

    out_flat = out2d.reshape(-1)
    if n_pad != N:
        out_flat = out_flat[: N * dim]
    return out_flat.reshape(*orig_shape, dim)


def _reference(x, dim=16, M=10000.0):
    half_dim = dim // 2
    emb = math.log(M) / half_dim
    emb = jnp.exp(jnp.arange(half_dim, dtype=jnp.float32) * -emb)
    emb = jnp.asarray(x, jnp.float32)[..., None] * emb
    return jnp.concatenate([jnp.sin(emb), jnp.cos(emb)], axis=-1)


if __name__ == "__main__":
    key = jax.random.PRNGKey(0)
    k1, k2 = jax.random.split(key)

    B, L, DIM = 2, 8, 16
    x = jax.random.uniform(k1, (B, L), dtype=jnp.float32) * 100.0

    out = jax.block_until_ready(sinusoidal_pos_emb(x, dim=DIM, M=10000.0))
    ref = _reference(x, dim=DIM, M=10000.0)
    assert out.shape == (B, L, DIM), out.shape
    assert jnp.allclose(out, ref, atol=1e-4, rtol=1e-4), "mismatch vs reference (small)"

    # Larger case: exercises the multi-row tile, exact-fit (no padding) path.
    x2 = jax.random.uniform(k2, (16, 384), dtype=jnp.float32) * 100.0
    out2 = jax.block_until_ready(sinusoidal_pos_emb(x2, dim=DIM, M=10000.0))
    ref2 = _reference(x2, dim=DIM, M=10000.0)
    assert out2.shape == (16, 384, DIM), out2.shape
    assert jnp.allclose(out2, ref2, atol=1e-4, rtol=1e-4), "mismatch vs reference (large)"

    # Integer diffusion-timestep style input: exercises dtype cast + 1-D shape.
    t = jnp.arange(8, dtype=jnp.int32)
    out3 = jax.block_until_ready(sinusoidal_pos_emb(t, dim=DIM, M=10000.0))
    ref3 = _reference(t, dim=DIM, M=10000.0)
    assert out3.shape == (8, DIM), out3.shape
    assert jnp.allclose(out3, ref3, atol=1e-4, rtol=1e-4), "mismatch vs reference (int)"

    print("KERNEL_OK")
</pallas_src>

<mosaic_0001>
module attributes {stable_mosaic.version = 11 : i64} {
  func.func @_sinusoidal_kernel(%arg0: i32, %arg1: memref<8x32xf32, #tpu.memory_space<vmem>>, %arg2: memref<32x512xf32, #tpu.memory_space<vmem>>, %arg3: memref<1x512xf32, #tpu.memory_space<vmem>>, %arg4: memref<8x512xf32, #tpu.memory_space<vmem>>) attributes {dimension_semantics = [#tpu.dimension_semantics<parallel>], iteration_bounds = array<i64: 1>, scalar_prefetch = 0 : i64, scratch_operands = 0 : i64, tpu.core_type = #tpu.core_type<tc>, window_params = [{transform_indices = @transform_0, window_bounds = array<i64: 8, 32>}, {pipeline_mode = #tpu.pipeline_mode<synchronous>, transform_indices = @transform_1, window_bounds = array<i64: 32, 512>}, {pipeline_mode = #tpu.pipeline_mode<synchronous>, transform_indices = @transform_2, window_bounds = array<i64: 1, 512>}, {transform_indices = @transform_3, window_bounds = array<i64: 8, 512>}]} {
    %c0 = arith.constant 0 : index
    %c0_0 = arith.constant 0 : index
    %0 = vector.load %arg1[%c0, %c0_0] : memref<8x32xf32, #tpu.memory_space<vmem>>, vector<8x32xf32>
    %c0_1 = arith.constant 0 : index
    %c0_2 = arith.constant 0 : index
    %1 = vector.load %arg2[%c0_1, %c0_2] : memref<32x512xf32, #tpu.memory_space<vmem>>, vector<32x512xf32>
    %cst = arith.constant dense<0.000000e+00> : vector<8x512xf32>
    %2 = tpu.matmul %0, %1, %cst {dimension_numbers = #tpu.dot_dimension_numbers<[1], [0], [0], [1], [0, 0, 1, 1], [], []>, precision = #tpu.contract_precision<fp32>} : vector<8x32xf32>, vector<32x512xf32>, vector<8x512xf32> -> vector<8x512xf32>
    %c0_3 = arith.constant 0 : index
    %c0_4 = arith.constant 0 : index
    %3 = vector.load %arg3[%c0_3, %c0_4] : memref<1x512xf32, #tpu.memory_space<vmem>>, vector<1x512xf32>
    %4 = vector.broadcast %3 : vector<1x512xf32> to vector<8x512xf32>
    %5 = arith.addf %2, %4 : vector<8x512xf32>
    %6 = math.sin %5 : vector<8x512xf32>
    %c0_5 = arith.constant 0 : index
    %c0_6 = arith.constant 0 : index
    %7 = vector.load %arg4[%c0_5, %c0_6] : memref<8x512xf32, #tpu.memory_space<vmem>>, vector<8x512xf32>
    tpu.vector_store %arg4[%c0_5, %c0_6], %6 {strides = array<i32>} : memref<8x512xf32, #tpu.memory_space<vmem>>, vector<8x512xf32>,
    return
  }
  func.func @transform_0(%arg0: i32) -> (i32, i32) {
    %c0_i32 = arith.constant 0 : i32
    %c0_i32_0 = arith.constant 0 : i32
    return %arg0, %c0_i32 : i32, i32
  }
  func.func @transform_1(%arg0: i32) -> (i32, i32) {
    %c0_i32 = arith.constant 0 : i32
    %c0_i32_0 = arith.constant 0 : i32
    %c0_i32_1 = arith.constant 0 : i32
    return %c0_i32, %c0_i32_0 : i32, i32
  }
  func.func @transform_2(%arg0: i32) -> (i32, i32) {
    %c0_i32 = arith.constant 0 : i32
    %c0_i32_0 = arith.constant 0 : i32
    %c0_i32_1 = arith.constant 0 : i32
    return %c0_i32, %c0_i32_0 : i32, i32
  }
  func.func @transform_3(%arg0: i32) -> (i32, i32) {
    %c0_i32 = arith.constant 0 : i32
    %c0_i32_0 = arith.constant 0 : i32
    return %arg0, %c0_i32 : i32, i32
  }
}

</mosaic_0001>

<bundles_post_ra>
// kernel: tpu_custom_call.1
= control target key start
LH: loop header
LB: loop body
LE: loop exit
PB: predicated region body
PF: predicated region fallthrough
CT: control target
= control target key end

     0   :  { %8 = vsyncpa [#allocation3], 0  ;;  %s2347_s0 = inlined_call_operand.hbm [shape: f32[8,32], index: 0, kind: input, shape index: {}]   ;;  %s2348_s1 = inlined_call_operand.hbm [shape: f32[32,512], index: 1, kind: input, shape index: {}]   ;;  %s2349_s2 = inlined_call_operand.hbm [shape: f32[1,512], index: 2, kind: input, shape index: {}]   ;;  %s2350_s3 = inlined_call_operand.hbm [shape: f32[8,512], index: 3, kind: output, shape index: {}]  }
   0x1   :  { %9 = vsyncpa [#allocation6], 0 }
   0x2   :  { %10 = vsyncpa [#allocation4], 0  ;;  %s1764_s12 = smov [#allocation5]  }
   0x3   :  { %s26_s13 = sshll.u32 %s1764_s12, 4  ;;  %s27_s13 = int_to_ptr.vmem [resolvable:$true] %s26_s13 }
   0x4   :  { %s1686_s14 = scalar_lea.vmem %s27_s13, 2048  ;;  %p1691_p1 = scmp.lt.s32.totalorder %s27_s13, %s27_s13 }
   0x5   :  { %p1687_p0 = scmp.ne.s32.totalorder %s27_s13, %s1686_s14  ;;  %p1692_p2 = scmp.lt.s32.totalorder %s1686_s14, %s1686_s14 }
   0x7   :  { %p1693_p3 = por %p1692_p2, %p1691_p1 }
   0x9   :  { %p1694_p4 = pnand %p1693_p3, %p1687_p0 }
   0xb   :  { %1697 = shalt.err (!%p1694_p4)
}
   0xc   :  { %s1765_s15 = smov 512   ;;  %s1766_s16 = smov 32  }
   0xd   :  { %32 = dma.hbm_to_vmem [thread:$0]  %s2348_s1, 2048, %s27_s13, [#allocation6], %s1765_s15, %s1765_s15, %s1766_s16  }
   0xe   :  { %s1767_s19 = smov [#allocation2]   ;;  %s1768_s21 = smov [#allocation7]  }
   0xf   :  { %s17_s20 = sshll.u32 %s1767_s19, 4  ;;  %s39_s22 = sshll.u32 %s1768_s21, 4  ;;  %s18_s20 = int_to_ptr.vmem [resolvable:$true] %s17_s20  ;;  %s40_s22 = int_to_ptr.vmem [resolvable:$true] %s39_s22 }
  0x10   :  { %s1706_s23 = scalar_lea.vmem %s18_s20, 128  ;;  %p1711_p6 = scmp.lt.s32.totalorder %s18_s20, %s18_s20 }
  0x11   :  { %p1707_p5 = scmp.ne.s32.totalorder %s18_s20, %s1706_s23  ;;  %p1712_p7 = scmp.lt.s32.totalorder %s1706_s23, %s1706_s23 }
  0x13   :  { %p1713_p8 = por %p1712_p7, %p1711_p6 }
  0x15   :  { %p1714_p9 = pnand %p1713_p8, %p1707_p5 }
  0x17   :  { %1717 = shalt.err (!%p1714_p9)
}
  0x18   :  { %20 = dma.hbm_to_vmem [thread:$0]  %s2347_s0, 128, %s18_s20, [#allocation3]  }
  0x19   :  { %s1726_s26 = scalar_lea.vmem %s40_s22, 64  ;;  %p1731_p11 = scmp.lt.s32.totalorder %s40_s22, %s40_s22 }
  0x1a   :  { %p1727_p10 = scmp.ne.s32.totalorder %s40_s22, %s1726_s26  ;;  %p1732_p12 = scmp.lt.s32.totalorder %s1726_s26, %s1726_s26 }
  0x1c   :  { %p1733_p13 = por %p1732_p12, %p1731_p11 }
  0x1e   :  { %p1734_p0 = pnand %p1733_p13, %p1727_p10 }
  0x20   :  { %1737 = shalt.err (!%p1734_p0)
}
  0x21   :  { %42 = dma.hbm_to_vmem [thread:$0]  %s2349_s2, 64, %s40_s22, [#allocation6]  }
  0x22   :  { %1758 = dma.done.wait [#allocation3], 128  }
  0x23   :  { %1759 = vsyncadd [#allocation3], 4294967168 }
  0x24   :  { %1760 = dma.done.wait [#allocation6], 2112  }
  0x25   :  { %1761 = vsyncadd [#allocation6], 4294965184  ;;  %v1769_v0 = vmov 0.0   ;;  %v66_v1 = vld [vmem:[#allocation5 + $0x68] sm:$0xff]  ;;  %v65_v2 = vld [vmem:[#allocation5 + $0x60] sm:$0xff]  ;;  %vm91_vm0 = vcmask 261120  }
  0x26   :  { %167 = vmatprep.mubr.f32.mxu0 %v1769_v0  ;;  %283 = vmatprep.mubr.f32.mxu1 %v1769_v0  ;;  %v62_v3 = vld [vmem:[#allocation5 + $0x48] sm:$0xff]  ;;  %v1808_v4 = vand.u32 4294901760, %v66_v1  ;;  %v1810_v5 = vand.u32 4294901760, %v65_v2  ;;  %v61_v7 = vld [vmem:[#allocation5 + $0x40] sm:$0xff]  ;;  %v52_v15 = vld [vmem:[#allocation2] sm:$0xff]  ;;  %s1776_s0 = smov [#allocation8]  }
  0x27   :  { %v1812_v6 = vand.u32 4294901760, %v62_v3  ;;  %v58_v8 = vld [vmem:[#allocation5 + $0x28] sm:$0xff]  ;;  %v57_v9 = vld [vmem:[#allocation5 + $0x20] sm:$0xff]  ;;  %v1814_v10 = vand.u32 4294901760, %v61_v7  ;;  %v93_v21 = vsel %vm91_vm0, %v52_v15, 0  ;;  %v68_v56 = vld [vmem:[#allocation5 + $0x78] sm:$0xff] }
  0x28   :  { %v1816_v11 = vand.u32 4294901760, %v58_v8  ;;  %v1818_v12 = vand.u32 4294901760, %v57_v9  ;;  %v54_v13 = vld [vmem:[#allocation5 + $0x8] sm:$0xff]  ;;  %v53_v14 = vld [vmem:[#allocation5] sm:$0xff]  ;;  %120 = vmatprep.subr.mxu0 %v1808_v4  ;;  %v1824_v17 = vsub.f32 %v66_v1, %v1808_v4  ;;  %v1829_v19 = vsub.f32 %v65_v2, %v1810_v5  ;;  %v67_v57 = vld [vmem:[#allocation5 + $0x70] sm:$0xff]  ;;  %s1607_s2 = sshll.u32 %s1776_s0, 4  ;;  %s1608_s2 = int_to_ptr.vmem [resolvable:$true] %s1607_s2 }
  0x29   :  { %v1821_v16 = vand.u32 4294901760, %v54_v13  ;;  %v1826_v18 = vand.u32 4294901760, %v53_v14  ;;  %122 = vmatpush1.msra.mxu0 %v1810_v5  ;;  %v1833_v20 = vsub.f32 %v62_v3, %v1812_v6  ;;  %v1837_v22 = vsub.f32 %v61_v7, %v1814_v10  ;;  %v64_v58 = vld [vmem:[#allocation5 + $0x58] sm:$0xff]  ;;  %v63_v60 = vld [vmem:[#allocation5 + $0x50] sm:$0xff]  ;;  %s1738_s28 = scalar_lea.vmem %s1608_s2, 512  ;;  %p1743_p2 = scmp.lt.s32.totalorder %s1608_s2, %s1608_s2 }
  0x2a   :  { %v1840_v23 = vsub.f32 %v58_v8, %v1816_v11  ;;  %124 = vmatprep.subr.mxu0 %v1812_v6  ;;  %v205_v24 = vand.u32 4294901760, %v1824_v17  ;;  %v211_v25 = vand.u32 4294901760, %v1829_v19  ;;  %v1845_v26 = vand.u32 4294901760, %v93_v21  ;;  %v60_v62 = vld [vmem:[#allocation5 + $0x38] sm:$0xff]  ;;  %v59_v1 = vld [vmem:[#allocation5 + $0x30] sm:$0xff]  ;;  %p1739_p1 = scmp.ne.s32.totalorder %s1608_s2, %s1738_s28  ;;  %p1744_p3 = scmp.lt.s32.totalorder %s1738_s28, %s1738_s28 }
  0x2b   :  { %v1848_v27 = vsub.f32 %v57_v9, %v1818_v12  ;;  %126 = vmatpush1.msra.mxu0 %v1814_v10  ;;  %v217_v28 = vand.u32 4294901760, %v1833_v20  ;;  %v223_v29 = vand.u32 4294901760, %v1837_v22  ;;  %v1855_v31 = vsub.f32 %v54_v13, %v1821_v16  ;;  %v56_v3 = vld [vmem:[#allocation5 + $0x18] sm:$0xff]  ;;  %v55_v9 = vld [vmem:[#allocation5 + $0x10] sm:$0xff] }
  0x2c   :  { %v229_v30 = vand.u32 4294901760, %v1840_v23  ;;  %128 = vmatprep.subr.mxu0 %v1816_v11  ;;  %v206_v32 = vsub.f32 %v1824_v17, %v205_v24  ;;  %v212_v33 = vsub.f32 %v1829_v19, %v211_v25  ;;  %v1865_v34 = vsub.f32 %v93_v21, %v1845_v26  ;;  %p1745_p4 = por %p1744_p3, %p1743_p2 }
  0x2d   :  { %v235_v35 = vand.u32 4294901760, %v1848_v27  ;;  %130 = vmatpush1.msra.mxu0 %v1818_v12  ;;  %v218_v36 = vsub.f32 %v1833_v20, %v217_v28  ;;  %v224_v37 = vsub.f32 %v1837_v22, %v223_v29  ;;  %v241_v39 = vand.u32 4294901760, %v1855_v31 }
  0x2e   :  { %v230_v38 = vsub.f32 %v1840_v23, %v229_v30  ;;  %132 = vmatprep.subr.mxu0 %v1821_v16  ;;  %v207_v40 = vand.u32 4294901760, %v206_v32  ;;  %v213_v41 = vand.u32 4294901760, %v212_v33  ;;  %v1881_v42 = vand.u32 4294901760, %v1865_v34  ;;  %p1746_p5 = pnand %p1745_p4, %p1739_p1 }
  0x2f   :  { %v236_v43 = vsub.f32 %v1848_v27, %v235_v35  ;;  %134 = vmatpush1.msra.mxu0 %v1826_v18  ;;  %v219_v44 = vand.u32 4294901760, %v218_v36  ;;  %v225_v45 = vand.u32 4294901760, %v224_v37  ;;  %v242_v46 = vsub.f32 %v1855_v31, %v241_v39 }
  0x30   :  { %208 = vmatprep.subr.mxu1 %v207_v40  ;;  %317 = vmatprep.subr.mxu0 %v1824_v17  ;;  %v171_v47 = vsub.f32 %v1865_v34, %v1881_v42  ;;  %v231_v48 = vand.u32 4294901760, %v230_v38  ;;  %v1894_v49 = vsub.f32 %v53_v14, %v1826_v18  ;;  %v1910_v59 = vand.u32 4294901760, %v68_v56 }
  0x31   :  { %214 = vmatpush1.msra.mxu1 %v213_v41  ;;  %v237_v50 = vand.u32 4294901760, %v236_v43  ;;  %v243_v52 = vand.u32 4294901760, %v242_v46  ;;  %v1914_v61 = vand.u32 4294901760, %v67_v57  ;;  %v1918_v63 = vand.u32 4294901760, %v64_v58 }
  0x32   :  { %220 = vmatprep.subr.mxu1 %v219_v44  ;;  %v1896_v51 = vand.u32 4294901760, %v171_v47  ;;  %v247_v53 = vand.u32 4294901760, %v1894_v49  ;;  %v1923_v2 = vand.u32 4294901760, %v63_v60  ;;  %v1928_v7 = vand.u32 4294901760, %v60_v62 }
  0x33   :  { %226 = vmatpush1.msra.mxu1 %v225_v45  ;;  %v1931_v8 = vsub.f32 %v68_v56, %v1910_v59  ;;  %v1937_v13 = vsub.f32 %v67_v57, %v1914_v61  ;;  %v1939_v14 = vand.u32 4294901760, %v59_v1  ;;  %v1944_v15 = vand.u32 4294901760, %v56_v3  ;;  %v69_v45 = vld [vmem:[#allocation7] sm:$0xf] }
  0x34   :  { %173 = vmatmul.mubr.f32.vlgmr.msra.gmra.mxu0 %v1896_v51  ;;  %232 = vmatprep.subr.mxu1 %v231_v48  ;;  %v248_v54 = vsub.f32 %v1894_v49, %v247_v53  ;;  %v1947_v17 = vsub.f32 %v64_v58, %v1918_v63 }
  0x35   :  { %320 = vmatpush1.msra.mxu0 %v1829_v19  ;;  %238 = vmatpush1.msra.mxu1 %v237_v50  ;;  %v1953_v19 = vsub.f32 %v63_v60, %v1923_v2  ;;  %v748_v21 = vand.u32 4294901760, %v1931_v8 }
  0x36   :  { %323 = vmatprep.subr.mxu0 %v1833_v20  ;;  %244 = vmatprep.subr.mxu1 %v243_v52  ;;  %v249_v55 = vand.u32 4294901760, %v248_v54  ;;  %v1955_v20 = vand.u32 4294901760, %v55_v9 }
  0x37   :  { %326 = vmatpush1.msra.mxu0 %v1837_v22  ;;  %371 = vmatprep.mubr.f32.mxu0 %v1769_v0  ;;  %v1962_v22 = vsub.f32 %v60_v62, %v1928_v7 }
  0x38   :  { %329 = vmatprep.subr.mxu0 %v1840_v23  ;;  %250 = vmatpush1.msra.mxu1 %v249_v55  ;;  %v1968_v23 = vsub.f32 %v59_v1, %v1939_v14 }
  0x39   :  { %332 = vmatpush1.msra.mxu0 %v1848_v27  ;;  %285 = vmatmul.mubr.f32.vlgmr.msra.gmra.mxu1 %v1845_v26  ;;  %v1974_v27 = vsub.f32 %v56_v3, %v1944_v15 }
  0x3a   :  { %335 = vmatprep.subr.mxu0 %v1855_v31  ;;  %405 = vmatprep.subr.mxu1 %v1808_v4  ;;  %v778_v31 = vand.u32 4294901760, %v1968_v23 }
  0x3b   :  { %338 = vmatpush1.msra.mxu0 %v1894_v49  ;;  %407 = vmatpush1.msra.mxu1 %v1810_v5  ;;  %v784_v32 = vand.u32 4294901760, %v1974_v27 }
  0x3c   :  { %374 = vmatmul.mubr.f32.vlgmr.msra.gmra.mxu0 %v1865_v34  ;;  %409 = vmatprep.subr.mxu1 %v1812_v6  ;;  %v779_v36 = vsub.f32 %v1968_v23, %v778_v31 }
  0x3d   :  { %489 = vmatprep.subr.mxu0 %v205_v24  ;;  %411 = vmatpush1.msra.mxu1 %v1814_v10  ;;  %v754_v24 = vand.u32 4294901760, %v1937_v13 }
  0x3e   :  { %493 = vmatpush1.msra.mxu0 %v211_v25  ;;  %413 = vmatprep.subr.mxu1 %v1816_v11  ;;  %v760_v25 = vand.u32 4294901760, %v1947_v17  ;;  %v780_v40 = vand.u32 4294901760, %v779_v36 }
  0x3f   :  { %497 = vmatprep.subr.mxu0 %v217_v28  ;;  %415 = vmatpush1.msra.mxu1 %v1818_v12  ;;  %v1979_v28 = vsub.f32 %v55_v9, %v1955_v20 }
  0x40   :  { %501 = vmatpush1.msra.mxu0 %v223_v29  ;;  %417 = vmatprep.subr.mxu1 %v1821_v16  ;;  %v766_v29 = vand.u32 4294901760, %v1953_v19 }
  0x41   :  { %505 = vmatprep.subr.mxu0 %v229_v30  ;;  %419 = vmatpush1.msra.mxu1 %v1826_v18  ;;  %v772_v30 = vand.u32 4294901760, %v1962_v22  ;;  %v790_v33 = vand.u32 4294901760, %v1979_v28 }
  0x42   :  { %452 = vmatprep.mubr.f32.mxu1 %v1769_v0  ;;  %509 = vmatpush1.msra.mxu0 %v235_v35 }
  0x43   :  { %456 = vmatmul.mubr.f32.vlgmr.msra.gmra.mxu1 %v1881_v42  ;;  %513 = vmatprep.subr.mxu0 %v241_v39  ;;  %v773_v35 = vsub.f32 %v1962_v22, %v772_v30 }
  0x44   :  { %583 = vmatprep.subr.mxu1 %v1808_v4  ;;  %517 = vmatpush1.msra.mxu0 %v247_v53  ;;  %v749_v4 = vsub.f32 %v1931_v8, %v748_v21 }
  0x45   :  { %550 = vmatprep.mubr.f32.mxu0 %v1769_v0  ;;  %585 = vmatpush1.msra.mxu1 %v1810_v5  ;;  %v755_v5 = vsub.f32 %v1937_v13, %v754_v24  ;;  %v774_v39 = vand.u32 4294901760, %v773_v35 }
  0x46   :  { %552 = vmatmul.mubr.f32.vlgmr.msra.gmra.mxu0 %v1845_v26  ;;  %587 = vmatprep.subr.mxu1 %v1812_v6  ;;  %v761_v6 = vsub.f32 %v1947_v17, %v760_v25 }
  0x47   :  { %663 = vmatprep.subr.mxu0 %v1910_v59  ;;  %589 = vmatpush1.msra.mxu1 %v1814_v10  ;;  %v767_v10 = vsub.f32 %v1953_v19, %v766_v29 }
  0x48   :  { %665 = vmatpush1.msra.mxu0 %v1914_v61  ;;  %591 = vmatprep.subr.mxu1 %v1816_v11  ;;  %v750_v11 = vand.u32 4294901760, %v749_v4  ;;  %v762_v37 = vand.u32 4294901760, %v761_v6 }
  0x49   :  { %667 = vmatprep.subr.mxu0 %v1918_v63  ;;  %593 = vmatpush1.msra.mxu1 %v1818_v12  ;;  %v756_v12 = vand.u32 4294901760, %v755_v5  ;;  %v768_v38 = vand.u32 4294901760, %v767_v10 }
  0x4a   :  { %669 = vmatpush1.msra.mxu0 %v1923_v2  ;;  %595 = vmatprep.subr.mxu1 %v1821_v16  ;;  %v785_v16 = vsub.f32 %v1974_v27, %v784_v32 }
  0x4b   :  { %671 = vmatprep.subr.mxu0 %v1928_v7  ;;  %597 = vmatpush1.msra.mxu1 %v1826_v18  ;;  %v791_v18 = vsub.f32 %v1979_v28, %v790_v33 }
  0x4c   :  { %630 = vmatprep.mubr.f32.mxu1 %v1769_v0  ;;  %673 = vmatpush1.msra.mxu0 %v1939_v14  ;;  %v786_v41 = vand.u32 4294901760, %v785_v16 }
  0x4d   :  { %632 = vmatmul.mubr.f32.vlgmr.msra.gmra.mxu1 %v1845_v26  ;;  %675 = vmatprep.subr.mxu0 %v1944_v15  ;;  %v792_v43 = vand.u32 4294901760, %v791_v18 }
  0x4e   :  { %751 = vmatprep.subr.mxu1 %v750_v11  ;;  %677 = vmatpush1.msra.mxu0 %v1955_v20 }
  0x4f   :  { %757 = vmatpush1.msra.mxu1 %v756_v12  ;;  %710 = vmatprep.mubr.f32.mxu0 %v1769_v0 }
  0x50   :  { %763 = vmatprep.subr.mxu1 %v762_v37  ;;  %860 = vmatprep.subr.mxu0 %v1931_v8 }
  0x51   :  { %716 = vmatmul.mubr.f32.vlgmr.msra.gmra.mxu0 %v1896_v51  ;;  %769 = vmatpush1.msra.mxu1 %v768_v38 }
  0x52   :  { %863 = vmatpush1.msra.mxu0 %v1937_v13  ;;  %775 = vmatprep.subr.mxu1 %v774_v39 }
  0x53   :  { %866 = vmatprep.subr.mxu0 %v1947_v17  ;;  %781 = vmatpush1.msra.mxu1 %v780_v40 }
  0x54   :  { %869 = vmatpush1.msra.mxu0 %v1953_v19  ;;  %787 = vmatprep.subr.mxu1 %v786_v41  ;;  %v1770_v41 = vmov 683565275  }
  0x55   :  { %872 = vmatprep.subr.mxu0 %v1962_v22  ;;  %793 = vmatpush1.msra.mxu1 %v792_v43 }
  0x56   :  { %826 = vmatprep.mubr.f32.mxu1 %v1769_v0  ;;  %875 = vmatpush1.msra.mxu0 %v1968_v23 }
  0x57   :  { %828 = vmatmul.mubr.f32.vlgmr.msra.gmra.mxu1 %v1845_v26  ;;  %878 = vmatprep.subr.mxu0 %v1974_v27 }
  0x58   :  { %948 = vmatprep.subr.mxu1 %v1910_v59  ;;  %881 = vmatpush1.msra.mxu0 %v1979_v28 }
  0x59   :  { %914 = vmatprep.mubr.f32.mxu0 %v1769_v0  ;;  %950 = vmatpush1.msra.mxu1 %v1914_v61 }
  0x5a   :  { %917 = vmatmul.mubr.f32.vlgmr.msra.gmra.mxu0 %v1865_v34  ;;  %952 = vmatprep.subr.mxu1 %v1918_v63  ;;  %v71_v34 = vlaneseq }
  0x5b   :  { %1032 = vmatprep.subr.mxu0 %v748_v21  ;;  %954 = vmatpush1.msra.mxu1 %v1923_v2 }
  0x5c   :  { %1036 = vmatpush1.msra.mxu0 %v754_v24  ;;  %956 = vmatprep.subr.mxu1 %v1928_v7 }
  0x5d   :  { %1040 = vmatprep.subr.mxu0 %v760_v25  ;;  %958 = vmatpush1.msra.mxu1 %v1939_v14 }
  0x5e   :  { %1044 = vmatpush1.msra.mxu0 %v766_v29  ;;  %960 = vmatprep.subr.mxu1 %v1944_v15 }
  0x5f   :  { %1048 = vmatprep.subr.mxu0 %v772_v30  ;;  %962 = vmatpush1.msra.mxu1 %v1955_v20 }
  0x60   :  { %995 = vmatprep.mubr.f32.mxu1 %v1769_v0  ;;  %1052 = vmatpush1.msra.mxu0 %v778_v31 }
  0x61   :  { %999 = vmatmul.mubr.f32.vlgmr.msra.gmra.mxu1 %v1881_v42  ;;  %1056 = vmatprep.subr.mxu0 %v784_v32  ;;  %v72_v42 = vshrl.u32 %v71_v34, 7 }
  0x62   :  { %1126 = vmatprep.subr.mxu1 %v1910_v59  ;;  %1060 = vmatpush1.msra.mxu0 %v790_v33 }
  0x63   :  { %1093 = vmatprep.mubr.f32.mxu0 %v1769_v0  ;;  %1128 = vmatpush1.msra.mxu1 %v1914_v61  ;;  %v73_v44 = vsub.s32 0, %v72_v42  ;;  %v77_v46 = vsub.s32 1, %v72_v42  ;;  %v81_v13 = vsub.s32 2, %v72_v42  ;;  %v85_v19 = vsub.s32 3, %v72_v42 }
  0x64   :  { %1095 = vmatmul.mubr.f32.vlgmr.msra.gmra.mxu0 %v1845_v26  ;;  %1130 = vmatprep.subr.mxu1 %v1918_v63  ;;  %v1771_v42 = vmov 2475754826  }
  0x65   :  { %1132 = vmatpush1.msra.mxu1 %v1923_v2  ;;  %1173 = vmatprep.mubr.f32.mxu1 %v1769_v0  ;;  %v74_v48 = vrot.slane %v69_v45, %v73_v44  ;;  %v78_v49 = vrot.slane %v69_v45, %v77_v46  ;;  %v82_v25 = vrot.slane %v69_v45, %v81_v13 }
  0x66   :  { %1134 = vmatprep.subr.mxu1 %v1928_v7  ;;  %v86_v28 = vrot.slane %v69_v45, %v85_v19  ;;  %v1772_v45 = vmov 2131351028  }
  0x67   :  { %1136 = vmatpush1.msra.mxu1 %v1939_v14 }
  0x68   :  { %1138 = vmatprep.subr.mxu1 %v1944_v15 }
  0x69   :  { %1140 = vmatpush1.msra.mxu1 %v1955_v20 }
  0x6a   :  { %1175 = vmatmul.mubr.f32.vlgmr.msra.gmra.mxu1 %v1845_v26 }
  0xf4   :  { %v174_v47 = vpop.f32.mrf.mxu0 }
  0xf5   :  { %v175_v51 = vadd.f32 %v174_v47, %v74_v48  ;;  %v1773_v47 = vmov 2102212464  }
  0xf6   :  { %v176_v50 = vpop.f32.mrf.mxu0 }
  0xf7   :  { %v177_v52 = vadd.f32 %v176_v50, %v78_v49  ;;  %v1774_v49 = vmov 920167782  }
  0xf9   :  { %v286_v0 = vpop.f32.mrf.mxu1 }
  0xfa   :  { %v287_v55 = vadd.f32 %v286_v0, %v175_v51 }
  0xfb   :  { %v288_v53 = vpop.f32.mrf.mxu1 }
  0xfc   :  { %v375_v54 = vpop.f32.mrf.mxu0  ;;  %v289_v57 = vadd.f32 %v288_v53, %v177_v52 }
  0xfd   :  { %v376_v59 = vadd.f32 %v375_v54, %v287_v55  ;;  %v1775_v55 = vmov 1326507024  }
  0xfe   :  { %v377_v58 = vpop.f32.mrf.mxu0 }
  0xff   :  { %v378_v61 = vadd.f32 %v377_v58, %v289_v57 }
 0x103   :  { %v457_v56 = vpop.f32.mrf.mxu1 }
 0x104   :  { %v458_v62 = vadd.f32 %v457_v56, %v376_v59 }
 0x105   :  { %v459_v26 = vpop.f32.mrf.mxu1 }
 0x106   :  { %v553_v60 = vpop.f32.mrf.mxu0  ;;  %v460_v63 = vadd.f32 %v459_v26, %v378_v61 }
 0x107   :  { %v554_v2 = vadd.f32 %v553_v60, %v458_v62 }
 0x108   :  { %v555_v1 = vpop.f32.mrf.mxu0 }
 0x109   :  { %v556_v7 = vadd.f32 %v555_v1, %v460_v63 }
 0x10d   :  { %v633_v3 = vpop.f32.mrf.mxu1 }
 0x10e   :  { %v2075_v8 = vadd.f32 %v633_v3, %v554_v2 }
 0x10f   :  { %v635_v9 = vpop.f32.mrf.mxu1 }
 0x110   :  { %v1181_v14 = vand.u32 2147483647, %v2075_v8  ;;  %v1184_v15 = vand.u32 2139095040, %v2075_v8  ;;  %v2079_v17 = vadd.f32 %v635_v9, %v556_v7  ;;  %vm1183_vm13 = vcmp.lt.s32.totalorder %v2075_v8, 0 }
 0x111   :  { %v717_v20 = vpop.f32.mrf.mxu0 }
 0x112   :  { %v1185_v21 = vshrl.u32 %v1184_v15, 23  ;;  %v1188_v22 = vand.u32 8388607, %v1181_v14  ;;  %v1285_v23 = vand.u32 2147483647, %v2079_v17  ;;  %v1288_v24 = vand.u32 2139095040, %v2079_v17 }
 0x113   :  { %v719_v30 = vpop.f32.mrf.mxu0  ;;  %v718_v10 = vadd.f32 %v717_v20, %v82_v25  ;;  %vm2169_vm14 = vcmp.le.f32.partialorder %v1181_v14, 0.7853982  ;;  %vm1287_vm15 = vcmp.lt.s32.totalorder %v2079_v17, 0 }
 0x114   :  { %v1617_v27 = vadd.s32 4294967169, %v1185_v21  ;;  %v1289_v29 = vshrl.u32 %v1288_v24, 23  ;;  %v1292_v4 = vand.u32 8388607, %v1285_v23  ;;  %v1189_v31 = vor.u32 8388608, %v1188_v22 }
 0x115   :  { %v720_v11 = vadd.f32 %v719_v30, %v86_v28 }
 0x116   :  { %v1191_v5 = vadd.s32 1, %v1617_v27  ;;  %v1621_v6 = vadd.s32 4294967169, %v1289_v29  ;;  %v1293_v32 = vor.u32 8388608, %v1292_v4  ;;  %v2087_v38 = vshll.u32 %v1189_v31, 8 }
 0x117   :  { %v829_v33 = vpop.f32.mrf.mxu1 }
 0x118   :  { %vm1192_vm1 = vcmp.gt.s32.totalorder %v1191_v5, 0  ;;  %v1295_v12 = vadd.s32 1, %v1621_v6  ;;  %v2089_v18 = vshll.u32 %v1293_v32, 8  ;;  %v830_v39 = vadd.f32 %v829_v33, %v718_v10 }
 0x119   :  { %v1193_v35 = vsel %vm1192_vm1, %v1191_v5, 0  ;;  %v831_v36 = vpop.f32.mrf.mxu1 }
 0x11a   :  { %v1194_v37 = vshrl.u32 %v1193_v35, 5  ;;  %v1195_v16 = vand.u32 31, %v1193_v35  ;;  %vm1296_vm2 = vcmp.gt.s32.totalorder %v1295_v12, 0  ;;  %v2092_v34 = vadd.f32 %v831_v36, %v720_v11  ;;  %v918_v63 = vpop.f32.mrf.mxu0 }
 0x11b   :  { %v1297_v26 = vsel %vm1296_vm2, %v1295_v12, 0  ;;  %v919_v22 = vadd.f32 %v918_v63, %v830_v39 }
 0x11c   :  { %v1196_v40 = vsub.s32 32, %v1195_v16  ;;  %v1198_v43 = vshll.u32 %v1770_v41, %v1195_v16  ;;  %v1201_v44 = vshll.u32 %v1771_v42, %v1195_v16  ;;  %v1204_v46 = vshll.u32 %v1772_v45, %v1195_v16 }
 0x11d   :  { %v1207_v48 = vshll.u32 %v1773_v47, %v1195_v16  ;;  %v1210_v50 = vshll.u32 %v1774_v49, %v1195_v16  ;;  %vm1213_vm3 = vcmp.lt.s32.totalorder %v1194_v37, 1  ;;  %vm1215_vm4 = vcmp.lt.s32.totalorder %v1194_v37, 3 }
 0x11e   :  { %v1199_v0 = vshrl.u32 %v1771_v42, %v1196_v40  ;;  %v1202_v51 = vshrl.u32 %v1772_v45, %v1196_v40  ;;  %v1205_v52 = vshrl.u32 %v1773_v47, %v1196_v40  ;;  %v1197_v53 = vshrl.u32 %v1770_v41, %v1196_v40 }
 0x11f   :  { %v1208_v54 = vshrl.u32 %v1774_v49, %v1196_v40  ;;  %v1211_v56 = vshrl.u32 %v1775_v55, %v1196_v40  ;;  %vm1216_vm5 = vcmp.lt.s32.totalorder %v1194_v37, 4  ;;  %v1299_v62 = vand.u32 31, %v1297_v26 }
 0x120   :  { %v1200_v57 = vor.u32 %v1199_v0, %v1198_v43  ;;  %v1203_v58 = vor.u32 %v1202_v51, %v1201_v44  ;;  %v1206_v59 = vor.u32 %v1205_v52, %v1204_v46  ;;  %vm1214_vm6 = vcmp.lt.s32.totalorder %v1194_v37, 2  ;;  %v920_v51 = vpop.f32.mrf.mxu0 }
 0x121   :  { %v1209_v60 = vor.u32 %v1208_v54, %v1207_v48  ;;  %v1212_v61 = vor.u32 %v1211_v56, %v1210_v50  ;;  %v1300_v19 = vsub.s32 32, %v1299_v62  ;;  %v1298_v28 = vshrl.u32 %v1297_v26, 5  ;;  %v1000_v40 = vpop.f32.mrf.mxu1 }
 0x122   :  { %v1217_v1 = vsel %vm1213_vm3, %v1197_v53, %v1200_v57  ;;  %v1218_v2 = vsel %vm1216_vm5, %v1206_v59, 2102212464  ;;  %v1221_v3 = vsel %vm1213_vm3, %v1200_v57, %v1203_v58  ;;  %v1225_v7 = vsel %vm1213_vm3, %v1203_v58, %v1206_v59 }
 0x123   :  { %v1219_v9 = vsel %vm1215_vm4, %v1203_v58, %v1218_v2  ;;  %v1222_v13 = vsel %vm1216_vm5, %v1209_v60, 920167782  ;;  %v1226_v15 = vsel %vm1216_vm5, %v1212_v61, 1326507024  ;;  %v1302_v31 = vshll.u32 %v1770_v41, %v1299_v62  ;;  %v1002_v58 = vpop.f32.mrf.mxu1 }
 0x124   :  { %v1223_v20 = vsel %vm1215_vm4, %v1206_v59, %v1222_v13  ;;  %v1227_v21 = vsel %vm1215_vm4, %v1209_v60, %v1226_v15  ;;  %v1220_v24 = vsel %vm1214_vm6, %v1217_v1, %v1219_v9  ;;  %v1303_v6 = vshrl.u32 %v1771_v42, %v1300_v19  ;;  %v1096_v59 = vpop.f32.mrf.mxu0 }
 0x125   :  { %v1224_v25 = vsel %vm1214_vm6, %v1221_v3, %v1223_v20  ;;  %v1228_v27 = vsel %vm1214_vm6, %v1225_v7, %v1227_v21  ;;  %v1305_v32 = vshll.u32 %v1771_v42, %v1299_v62  ;;  %v1306_v10 = vshrl.u32 %v1772_v45, %v1300_v19 }
 0x126   :  { %v2112_v29 = vmul.u32.u64.low %v2087_v38, %v1228_v27  ;;  %v2113_v4 = vmul.u32.u64.high %v2087_v38, %v1228_v27, %v2112_v29  ;;  %v2116_v30 = vmul.u32.u64.low %v2087_v38, %v1224_v25  ;;  %v2117_v5 = vmul.u32.u64.high %v2087_v38, %v1224_v25, %v2116_v30  ;;  %v1098_v25 = vpop.f32.mrf.mxu0 }
 0x127   :  { %v1308_v33 = vshll.u32 %v1772_v45, %v1299_v62  ;;  %v1309_v11 = vshrl.u32 %v1773_v47, %v1300_v19  ;;  %v1311_v35 = vshll.u32 %v1773_v47, %v1299_v62  ;;  %v1312_v12 = vshrl.u32 %v1774_v49, %v1300_v19 }
 0x128   :  { %v1304_v36 = vor.u32 %v1303_v6, %v1302_v31  ;;  %v1307_v37 = vor.u32 %v1306_v10, %v1305_v32  ;;  %v1314_v16 = vshll.u32 %v1774_v49, %v1299_v62  ;;  %v1315_v39 = vshrl.u32 %v1775_v55, %v1300_v19 }
 0x129   :  { %v1236_v43 = vmul.u32 %v2087_v38, %v1220_v24  ;;  %vm1238_vm7 = vc.u32 %v2113_v4, %v2116_v30  ;;  %v1239_v44 = vadd.s32 1, %v2117_v5  ;;  %v1310_v46 = vor.u32 %v1309_v11, %v1308_v33 }
 0x12a   :  { %v1301_v48 = vshrl.u32 %v1770_v41, %v1300_v19  ;;  %v1313_v50 = vor.u32 %v1312_v12, %v1311_v35  ;;  %v1316_v0 = vor.u32 %v1315_v39, %v1314_v16  ;;  %vm1317_vm8 = vcmp.lt.s32.totalorder %v1298_v28, 1  ;;  %v1176_v3 = vpop.f32.mrf.mxu1 }
 0x12b   :  { %v1240_v52 = vsel %vm1238_vm7, %v1239_v44, %v2117_v5  ;;  %vm1319_vm9 = vcmp.lt.s32.totalorder %v1298_v28, 3  ;;  %vm1320_vm10 = vcmp.lt.s32.totalorder %v1298_v28, 4  ;;  %v1325_v53 = vsel %vm1317_vm8, %v1304_v36, %v1307_v37 }
 0x12c   :  { %v1241_v54 = vadd.s32 %v1240_v52, %v1236_v43  ;;  %v1322_v56 = vsel %vm1320_vm10, %v1310_v46, 2102212464  ;;  %v1326_v38 = vsel %vm1320_vm10, %v1313_v50, 920167782  ;;  %v1329_v57 = vsel %vm1317_vm8, %v1307_v37, %v1310_v46  ;;  %v1178_v31 = vpop.f32.mrf.mxu1 }
 0x12d   :  { %vm1318_vm11 = vcmp.lt.s32.totalorder %v1298_v28, 2  ;;  %v1321_v26 = vsel %vm1317_vm8, %v1301_v48, %v1304_v36  ;;  %v1327_v60 = vsel %vm1319_vm9, %v1310_v46, %v1326_v38  ;;  %v1330_v61 = vsel %vm1320_vm10, %v1316_v0, 1326507024 }
 0x12e   :  { %v1242_v62 = vadd.s32 536870912, %v1241_v54  ;;  %v1323_v63 = vsel %vm1319_vm9, %v1307_v37, %v1322_v56  ;;  %v1328_v1 = vsel %vm1318_vm11, %v1325_v53, %v1327_v60  ;;  %v1331_v2 = vsel %vm1319_vm9, %v1313_v50, %v1330_v61 }
 0x12f   :  { %v1332_v7 = vsel %vm1318_vm11, %v1329_v57, %v1331_v2  ;;  %v2142_v9 = vmul.u32.u64.low %v2089_v18, %v1328_v1  ;;  %v2143_v13 = vmul.u32.u64.high %v2089_v18, %v1328_v1, %v2142_v9  ;;  %v921_v15 = vadd.f32 %v920_v51, %v2092_v34 }
 0x130   :  { %v1243_v19 = vshrl.u32 %v1242_v62, 30  ;;  %v2147_v20 = vmul.u32.u64.low %v2089_v18, %v1332_v7  ;;  %v2148_v21 = vmul.u32.u64.high %v2089_v18, %v1332_v7, %v2147_v20  ;;  %v1001_v24 = vadd.f32 %v1000_v40, %v919_v22 }
 0x131   :  { %v1324_v27 = vsel %vm1318_vm11, %v1321_v26, %v1323_v63  ;;  %v1003_v29 = vadd.f32 %v1002_v58, %v921_v15  ;;  %v1343_v6 = vadd.s32 1, %v2143_v13  ;;  %v1237_v56 = vadd.s32 %v2116_v30, %v2113_v4 }
 0x132   :  { %v1244_v5 = vshll.u32 %v1243_v19, 30  ;;  %v1097_v32 = vadd.f32 %v1096_v59, %v1001_v24  ;;  %v1340_v11 = vmul.u32 %v2089_v18, %v1324_v27  ;;  %vm1342_vm12 = vc.u32 %v2148_v21, %v2142_v9 }
 0x133   :  { %v1099_v10 = vadd.f32 %v1098_v25, %v1003_v29  ;;  %v1344_v34 = vsel %vm1342_vm12, %v1343_v6, %v2143_v13  ;;  %v1267_v36 = vsub.s32 4, %v1243_v19  ;;  %vm2214_vm6 = vcmp.le.f32.partialorder %v1285_v23, 0.7853982 }
 0x134   :  { %v1245_v33 = vsub.s32 %v1241_v54, %v1244_v5  ;;  %v2155_v35 = vadd.f32 %v1176_v3, %v1097_v32  ;;  %v1345_v12 = vadd.s32 %v1344_v34, %v1340_v11  ;;  %v1341_v3 = vadd.s32 %v2142_v9, %v2148_v21 }
 0x135   :  { %v2157_v22 = vadd.f32 %v1178_v31, %v1099_v10  ;;  %v1268_v48 = vsel %vm1183_vm13, %v1267_v36, %v1243_v19 }
 0x136   :  { %v1247_v28 = vsub.s32 0, %v1245_v33  ;;  %v1389_v37 = vand.u32 2147483647, %v2155_v35  ;;  %v1392_v16 = vand.u32 2139095040, %v2155_v35  ;;  %v1346_v40 = vadd.s32 536870912, %v1345_v12 }
 0x137   :  { %v1496_v18 = vand.u32 2139095040, %v2157_v22  ;;  %v1270_v58 = vsel %vm2169_vm14, 0, %v1268_v48  ;;  %v1493_v14 = vand.u32 2147483647, %v2157_v22 }
 0x138   :  { %v1618_v39 = vmin.u32 %v1247_v28, %v1245_v33  ;;  %v1393_v43 = vshrl.u32 %v1392_v16, 23  ;;  %v1347_v46 = vshrl.u32 %v1346_v40, 30  ;;  %v1396_v0 = vand.u32 8388607, %v1389_v37 }
 0x139   :  { %v1497_v51 = vshrl.u32 %v1496_v18, 23  ;;  %v2182_v2 = vadd.s32 3, %v1270_v58  ;;  %v2196_v29 = vand.u32 8388607, %v1493_v14 }
 0x13a   :  { %v1249_v44 = vclz %v1618_v39  ;;  %v1625_v50 = vadd.s32 4294967169, %v1393_v43  ;;  %v1348_v54 = vshll.u32 %v1347_v46, 30  ;;  %v1371_v60 = vsub.s32 4, %v1347_v46 }
 0x13b   :  { %v1629_v57 = vadd.s32 4294967169, %v1497_v51  ;;  %v1397_v61 = vor.u32 8388608, %v1396_v0 }
 0x13c   :  { %v1619_v53 = vadd.s32 4294967294, %v1249_v44  ;;  %v1399_v38 = vadd.s32 1, %v1625_v50  ;;  %v2178_v59 = vsub.s32 %v1345_v12, %v1348_v54  ;;  %v2190_v24 = vsel %vm1287_vm15, %v1371_v60, %v1347_v46 }
 0x13d   :  { %v1503_v30 = vadd.s32 1, %v1629_v57  ;;  %v2192_v27 = vshll.u32 %v1397_v61, 8 }
 0x13e   :  { %vm1620_vm0 = vcmp.lt.s32.totalorder %v1619_v53, 0  ;;  %vm1400_vm1 = vcmp.gt.s32.totalorder %v1399_v38, 0  ;;  %v1351_v4 = vsub.s32 0, %v2178_v59 }
 0x13f   :  { %v1252_v26 = vsel %vm1620_vm0, 0, %v1619_v53  ;;  %v1401_v7 = vsel %vm1400_vm1, %v1399_v38, 0  ;;  %vm1504_vm2 = vcmp.gt.s32.totalorder %v1503_v30, 0 }
 0x140   :  { %v1253_v62 = vsub.s32 32, %v1252_v26  ;;  %v1257_v63 = vsub.s32 4294967266, %v1252_v26  ;;  %v1254_v1 = vshll.u32 %v1245_v33, %v1252_v26  ;;  %v1622_v19 = vmin.u32 %v1351_v4, %v2178_v59 }
 0x141   :  { %v2186_v20 = vshrl.u32 %v1401_v7, 5  ;;  %v1403_v25 = vand.u32 31, %v1401_v7 }
 0x142   :  { %v1255_v13 = vshrl.u32 %v1237_v56, %v1253_v62  ;;  %v1258_v15 = vadd.s32 127, %v1257_v63  ;;  %v1353_v21 = vclz %v1622_v19 }
 0x143   :  { %v1404_v31 = vsub.s32 32, %v1403_v25  ;;  %v1406_v6 = vshll.u32 %v1770_v41, %v1403_v25  ;;  %v1409_v32 = vshll.u32 %v1771_v42, %v1403_v25  ;;  %vm1421_vm3 = vcmp.lt.s32.totalorder %v2186_v20, 1 }
 0x144   :  { %v1256_v5 = vor.u32 %v1255_v13, %v1254_v1  ;;  %v1259_v9 = vshll.u32 %v1258_v15, 23  ;;  %v1623_v11 = vadd.s32 4294967294, %v1353_v21  ;;  %v1412_v34 = vshll.u32 %v1772_v45, %v1403_v25 }
 0x145   :  { %v1407_v28 = vshrl.u32 %v1771_v42, %v1404_v31  ;;  %v1410_v12 = vshrl.u32 %v1772_v45, %v1404_v31  ;;  %v1413_v36 = vshrl.u32 %v1773_v47, %v1404_v31  ;;  %v1415_v16 = vshll.u32 %v1773_v47, %v1403_v25 }
 0x146   :  { %v1260_v10 = vor.u32 4788187, %v1259_v9  ;;  %v1263_v33 = vcvt.s32.f32 %v1256_v5  ;;  %vm1624_vm4 = vcmp.lt.s32.totalorder %v1623_v11, 0  ;;  %v1405_v40 = vshrl.u32 %v1770_v41, %v1404_v31 }
 0x147   :  { %v1416_v43 = vshrl.u32 %v1774_v49, %v1404_v31  ;;  %v1356_v18 = vsel %vm1624_vm4, 0, %v1623_v11  ;;  %v1408_v44 = vor.u32 %v1407_v28, %v1406_v6  ;;  %v1411_v46 = vor.u32 %v1410_v12, %v1409_v32 }
 0x148   :  { %v1261_v39 = vand.u32 2147483647, %v1260_v10  ;;  %v1414_v48 = vor.u32 %v1413_v36, %v1412_v34  ;;  %v1357_v0 = vsub.s32 32, %v1356_v18  ;;  %v1361_v51 = vsub.s32 4294967266, %v1356_v18 }
 0x149   :  { %v1418_v53 = vshll.u32 %v1774_v49, %v1403_v25  ;;  %v1358_v54 = vshll.u32 %v2178_v59, %v1356_v18  ;;  %v1417_v56 = vor.u32 %v1416_v43, %v1415_v16  ;;  %v1419_v38 = vshrl.u32 %v1775_v55, %v1404_v31 }
 0x14a   :  { %v1264_v50 = vmul.f32 %v1263_v33, %v1261_v39  ;;  %vm1423_vm5 = vcmp.lt.s32.totalorder %v2186_v20, 3  ;;  %v1359_v26 = vshrl.u32 %v1341_v3, %v1357_v0  ;;  %v1362_v60 = vadd.s32 127, %v1361_v51 }
 0x14b   :  { %vm1424_vm7 = vcmp.lt.s32.totalorder %v2186_v20, 4  ;;  %v1420_v61 = vor.u32 %v1419_v38, %v1418_v53  ;;  %v1425_v59 = vsel %vm1421_vm3, %v1405_v40, %v1408_v44  ;;  %v1429_v63 = vsel %vm1421_vm3, %v1408_v44, %v1411_v46 }
 0x14c   :  { %v1265_v57 = vxor.u32 2147483648, %v1264_v50  ;;  %v1426_v62 = vsel %vm1424_vm7, %v1414_v48, 2102212464  ;;  %v1360_v4 = vor.u32 %v1359_v26, %v1358_v54  ;;  %v1363_v1 = vshll.u32 %v1362_v60, 23 }
 0x14d   :  { %v1427_v3 = vsel %vm1423_vm5, %v1411_v46, %v1426_v62  ;;  %vm1422_vm8 = vcmp.lt.s32.totalorder %v2186_v20, 2  ;;  %v1430_v13 = vsel %vm1424_vm7, %v1417_v56, 920167782  ;;  %v1505_v15 = vsel %vm1504_vm2, %v1503_v30, 0 }
 0x14e   :  { %v1266_v23 = vsel %vm1183_vm13, %v1265_v57, %v1264_v50  ;;  %v1364_v19 = vor.u32 4788187, %v1363_v1  ;;  %v1428_v25 = vsel %vm1422_vm8, %v1425_v59, %v1427_v3  ;;  %v1431_v5 = vsel %vm1423_vm5, %v1414_v48, %v1430_v13 }
 0x14f   :  { %v1269_v7 = vsel %vm2169_vm14, %v2075_v8, %v1266_v23  ;;  %v1433_v9 = vsel %vm1421_vm3, %v1411_v46, %v1414_v48  ;;  %v1367_v52 = vcvt.s32.f32 %v1360_v4  ;;  %v1432_v21 = vsel %vm1422_vm8, %v1429_v63, %v1431_v5 }
 0x150   :  { %1662 = vsinq.f32 %v1269_v7  ;;  %v1434_v31 = vsel %vm1424_vm7, %v1420_v61, 1326507024  ;;  %v1365_v6 = vand.u32 2147483647, %v1364_v19  ;;  %v2254_v33 = vand.u32 3, %v2182_v2 }
 0x151   :  { %v1435_v30 = vsel %vm1423_vm5, %v1417_v56, %v1434_v31  ;;  %v2249_v32 = vmul.u32.u64.low %v2192_v27, %v1432_v21  ;;  %v2250_v10 = vmul.u32.u64.high %v2192_v27, %v1432_v21, %v2249_v32  ;;  %1664 = vcosq.f32 %v1269_v7 }
 0x152   :  { %v1436_v11 = vsel %vm1422_vm8, %v1433_v9, %v1435_v30  ;;  %v1507_v34 = vand.u32 31, %v1505_v15  ;;  %v1368_v28 = vmul.f32 %v1367_v52, %v1365_v6  ;;  %v1501_v16 = vor.u32 8388608, %v2196_v29 }
 0x153   :  { %v2259_v12 = vmul.u32.u64.low %v2192_v27, %v1436_v11  ;;  %v2260_v36 = vmul.u32.u64.high %v2192_v27, %v1436_v11, %v2259_v12  ;;  %v1374_v39 = vsel %vm2214_vm6, 0, %v2190_v24  ;;  %v1444_v40 = vmul.u32 %v2192_v27, %v1428_v25 }
 0x154   :  { %v1506_v43 = vshrl.u32 %v1505_v15, 5  ;;  %v1508_v2 = vsub.s32 32, %v1507_v34  ;;  %v1369_v18 = vxor.u32 2147483648, %v1368_v28  ;;  %v1447_v20 = vadd.s32 1, %v2250_v10 }
 0x155   :  { %v1510_v44 = vshll.u32 %v1770_v41, %v1507_v34  ;;  %v1513_v46 = vshll.u32 %v1771_v42, %v1507_v34  ;;  %v1516_v29 = vshll.u32 %v1772_v45, %v1507_v34  ;;  %vm1446_vm9 = vc.u32 %v2260_v36, %v2249_v32 }
 0x156   :  { %v1511_v48 = vshrl.u32 %v1771_v42, %v1508_v2  ;;  %v1514_v50 = vshrl.u32 %v1772_v45, %v1508_v2  ;;  %v1517_v0 = vshrl.u32 %v1773_v47, %v1508_v2  ;;  %v1370_v24 = vsel %vm1287_vm15, %v1369_v18, %v1368_v28 }
 0x157   :  { %v1519_v27 = vshll.u32 %v1773_v47, %v1507_v34  ;;  %v1520_v51 = vshrl.u32 %v1774_v49, %v1508_v2  ;;  %v1373_v42 = vsel %vm2214_vm6, %v2079_v17, %v1370_v24  ;;  %v1448_v53 = vsel %vm1446_vm9, %v1447_v20, %v2250_v10 }
 0x158   :  { %v1512_v54 = vor.u32 %v1511_v48, %v1510_v44  ;;  %v1515_v45 = vor.u32 %v1514_v50, %v1513_v46  ;;  %1666 = vcosq.f32 %v1373_v42  ;;  %v1449_v56 = vadd.s32 %v1448_v53, %v1444_v40 }
 0x159   :  { %v1518_v38 = vor.u32 %v1517_v0, %v1516_v29  ;;  %v1521_v57 = vor.u32 %v1520_v51, %v1519_v27  ;;  %1668 = vsinq.f32 %v1373_v42  ;;  %v1509_v26 = vshrl.u32 %v1770_v41, %v1508_v2 }
 0x15a   :  { %v1522_v60 = vshll.u32 %v1774_v49, %v1507_v34  ;;  %v1523_v47 = vshrl.u32 %v1775_v55, %v1508_v2  ;;  %v1450_v61 = vadd.s32 536870912, %v1449_v56  ;;  %vm1525_vm10 = vcmp.lt.s32.totalorder %v1506_v43, 1 }
 0x15b   :  { %vm1527_vm11 = vcmp.lt.s32.totalorder %v1506_v43, 3  ;;  %vm1528_vm12 = vcmp.lt.s32.totalorder %v1506_v43, 4  ;;  %v1533_v62 = vsel %vm1525_vm10, %v1512_v54, %v1515_v45  ;;  %vm1526_vm13 = vcmp.lt.s32.totalorder %v1506_v43, 2 }
 0x15c   :  { %v1524_v58 = vor.u32 %v1523_v47, %v1522_v60  ;;  %v1530_v59 = vsel %vm1528_vm12, %v1518_v38, 2102212464  ;;  %v1534_v63 = vsel %vm1528_vm12, %v1521_v57, 920167782  ;;  %v2287_v4 = vshrl.u32 %v1450_v61, 30 }
 0x15d   :  { %v1663_v23 = vpop.eup %1662  ;;  %v1535_v1 = vsel %vm1527_vm11, %v1518_v38, %v1534_v63  ;;  %v1537_v3 = vsel %vm1525_vm10, %v1515_v45, %v1518_v38  ;;  %v1529_v41 = vsel %vm1525_vm10, %v1509_v26, %v1512_v54  ;;  %v1541_v55 = vshll.u32 %v1501_v16, 8 }
 0x15e   :  { %v1536_v49 = vsel %vm1526_vm13, %v1533_v62, %v1535_v1  ;;  %v1538_v7 = vsel %vm1528_vm12, %v1524_v58, 1326507024  ;;  %v1665_v13 = vpop.eup %1664  ;;  %v1452_v15 = vshll.u32 %v2287_v4, 30  ;;  %v1531_v19 = vsel %vm1527_vm11, %v1515_v45, %v1530_v59 }
 0x15f   :  { %v1539_v25 = vsel %vm1527_vm11, %v1521_v57, %v1538_v7  ;;  %v1278_v5 = vxor.u32 2147483648, %v1663_v23  ;;  %v1378_v9 = vadd.s32 3, %v1374_v39  ;;  %v1532_v11 = vsel %vm1526_vm13, %v1529_v41, %v1531_v19 }
 0x160   :  { %v1540_v52 = vsel %vm1526_vm13, %v1537_v3, %v1539_v25  ;;  %v2295_v21 = vmul.u32.u64.low %v1541_v55, %v1536_v49  ;;  %v2296_v31 = vmul.u32.u64.high %v1541_v55, %v1536_v49, %v2295_v21  ;;  %v1453_v6 = vsub.s32 %v1449_v56, %v1452_v15 }
 0x161   :  { %v2299_v30 = vmul.u32.u64.low %v1541_v55, %v1540_v52  ;;  %v2300_v10 = vmul.u32.u64.high %v1541_v55, %v1540_v52, %v2299_v30  ;;  %vm1277_vm14 = vcmp.eq.s32.totalorder %v2254_v33, 0  ;;  %v1281_v34 = vxor.u32 2147483648, %v1665_v13 }
 0x162   :  { %v1455_v28 = vsub.s32 0, %v1453_v6  ;;  %v1279_v12 = vsel %vm1277_vm14, %v1665_v13, %v1278_v5  ;;  %vm1280_vm15 = vcmp.eq.s32.totalorder %v2254_v33, 2  ;;  %v1379_v16 = vand.u32 3, %v1378_v9 }
 0x163   :  { %v1551_v39 = vadd.s32 1, %v2296_v31  ;;  %v1282_v40 = vsel %vm1280_vm15, %v1281_v34, %v1663_v23  ;;  %v1548_v18 = vmul.u32 %v1541_v55, %v1532_v11  ;;  %vm1550_vm0 = vc.u32 %v2300_v10, %v2295_v21 }
 0x164   :  { %v1626_v2 = vmin.u32 %v1455_v28, %v1453_v6  ;;  %vm1276_vm1 = vcmp.lt.s32.totalorder %v2254_v33, 2  ;;  %vm1273_vm2 = vweird.f32 %v2075_v8  ;;  %vm1384_vm3 = vcmp.eq.s32.totalorder %v1379_v16, 2 }
 0x165   :  { %v1667_v43 = vpop.eup %1666  ;;  %v1552_v20 = vsel %vm1550_vm0, %v1551_v39, %v2296_v31  ;;  %v1283_v44 = vsel %vm1276_vm1, %v1279_v12, %v1282_v40  ;;  %vm1381_vm4 = vcmp.eq.s32.totalorder %v1379_v16, 0  ;;  %vm1380_vm5 = vcmp.lt.s32.totalorder %v1379_v16, 2 }
 0x166   :  { %v1669_v46 = vpop.eup %1668  ;;  %v1457_v48 = vclz %v1626_v2  ;;  %v1553_v50 = vadd.s32 %v1552_v20, %v1548_v18  ;;  %v1284_v29 = vsel %vm1273_vm2, nan, %v1283_v44  ;;  %v1385_v0 = vxor.u32 2147483648, %v1667_v43 }
 0x167   :  { %v1382_v24 = vxor.u32 2147483648, %v1669_v46  ;;  %1597 = vst [vmem:[#allocation8] sm:$0xff] %v1284_v29  ;;  %vm1377_vm7 = vweird.f32 %v2079_v17  ;;  %v1445_v56 = vadd.s32 %v2249_v32, %v2260_v36  ;;  %vm2316_vm9 = vcmp.le.f32.partialorder %v1389_v37, 0.7853982 }
 0x168   :  { %v1627_v27 = vadd.s32 4294967294, %v1457_v48  ;;  %v1554_v51 = vadd.s32 536870912, %v1553_v50  ;;  %v1386_v42 = vsel %vm1384_vm3, %v1385_v0, %v1669_v46  ;;  %vm1391_vm10 = vcmp.lt.s32.totalorder %v2155_v35, 0 }
 0x169   :  { %v1383_v33 = vsel %vm1381_vm4, %v1667_v43, %v1382_v24  ;;  %v1475_v36 = vsub.s32 4, %v2287_v4  ;;  %v1549_v19 = vadd.s32 %v2295_v21, %v2300_v10  ;;  %vm1495_vm11 = vcmp.lt.s32.totalorder %v2157_v22, 0 }
 0x16a   :  { %vm1628_vm6 = vcmp.lt.s32.totalorder %v1627_v27, 0  ;;  %v1555_v53 = vshrl.u32 %v1554_v51, 30  ;;  %v1387_v8 = vsel %vm1380_vm5, %v1383_v33, %v1386_v42  ;;  %vm2333_vm12 = vcmp.le.f32.partialorder %v1493_v14, 0.7853982 }
 0x16b   :  { %v1460_v54 = vsel %vm1628_vm6, 0, %v1627_v27  ;;  %v1388_v45 = vsel %vm1377_vm7, nan, %v1387_v8  ;;  %vm1481_vm0 = vweird.f32 %v2155_v35  ;;  %vm1585_vm4 = vweird.f32 %v2157_v22 }
 0x16c   :  { %v1461_v38 = vsub.s32 32, %v1460_v54  ;;  %v1465_v57 = vsub.s32 4294967266, %v1460_v54  ;;  %v1556_v26 = vshll.u32 %v1555_v53, 30  ;;  %1598 = vst [vmem:[#allocation8 + $0x8] sm:$0xff] %v1388_v45  ;;  %v1462_v60 = vshll.u32 %v1453_v6, %v1460_v54 }
 0x16d   :  { %v1476_v6 = vsel %vm1391_vm10, %v1475_v36, %v2287_v4  ;;  %v1579_v2 = vsub.s32 4, %v1555_v53 }
 0x16e   :  { %v1463_v47 = vshrl.u32 %v1445_v56, %v1461_v38  ;;  %v1466_v61 = vadd.s32 127, %v1465_v57  ;;  %v1557_v58 = vsub.s32 %v1553_v50, %v1556_v26  ;;  %v1478_v34 = vsel %vm2316_vm9, 0, %v1476_v6 }
 0x16f   :  { %v1482_v12 = vadd.s32 3, %v1478_v34  ;;  %v1580_v48 = vsel %vm1495_vm11, %v1579_v2, %v1555_v53 }
 0x170   :  { %v1464_v59 = vor.u32 %v1463_v47, %v1462_v60  ;;  %v1467_v62 = vshll.u32 %v1466_v61, 23  ;;  %v1559_v63 = vsub.s32 0, %v1557_v58  ;;  %v1582_v0 = vsel %vm2333_vm12, 0, %v1580_v48 }
 0x171   :  { %v1483_v40 = vand.u32 3, %v1482_v12  ;;  %v1586_v51 = vadd.s32 3, %v1582_v0 }
 0x172   :  { %v1468_v23 = vor.u32 4788187, %v1467_v62  ;;  %v1630_v1 = vmin.u32 %v1559_v63, %v1557_v58  ;;  %v1471_v3 = vcvt.s32.f32 %v1464_v59 }
 0x173   :  { %vm1488_vm13 = vcmp.eq.s32.totalorder %v1483_v40, 2  ;;  %vm1485_vm14 = vcmp.eq.s32.totalorder %v1483_v40, 0  ;;  %vm1484_vm15 = vcmp.lt.s32.totalorder %v1483_v40, 2  ;;  %v1587_v42 = vand.u32 3, %v1586_v51 }
 0x174   :  { %v1469_v17 = vand.u32 2147483647, %v1468_v23  ;;  %v1561_v41 = vclz %v1630_v1 }
 0x175   :  { %vm1592_vm1 = vcmp.eq.s32.totalorder %v1587_v42, 2  ;;  %vm1589_vm2 = vcmp.eq.s32.totalorder %v1587_v42, 0  ;;  %vm1588_vm3 = vcmp.lt.s32.totalorder %v1587_v42, 2 }
 0x176   :  { %v1472_v49 = vmul.f32 %v1471_v3, %v1469_v17  ;;  %v1631_v7 = vadd.s32 4294967294, %v1561_v41 }
 0x178   :  { %v1473_v55 = vxor.u32 2147483648, %v1472_v49  ;;  %vm1632_vm8 = vcmp.lt.s32.totalorder %v1631_v7, 0 }
 0x179   :  { %v1564_v13 = vsel %vm1632_vm8, 0, %v1631_v7 }
 0x17a   :  { %v1474_v15 = vsel %vm1391_vm10, %v1473_v55, %v1472_v49  ;;  %v1565_v25 = vsub.s32 32, %v1564_v13  ;;  %v1569_v5 = vsub.s32 4294967266, %v1564_v13  ;;  %v1566_v37 = vshll.u32 %v1557_v58, %v1564_v13 }
 0x17b   :  { %v1477_v9 = vsel %vm2316_vm9, %v2155_v35, %v1474_v15 }
 0x17c   :  { %1670 = vcosq.f32 %v1477_v9  ;;  %v1567_v52 = vshrl.u32 %v1549_v19, %v1565_v25  ;;  %v1570_v31 = vadd.s32 127, %v1569_v5 }
 0x17d   :  { %1672 = vsinq.f32 %v1477_v9 }
 0x17e   :  { %v1568_v30 = vor.u32 %v1567_v52, %v1566_v37  ;;  %v1571_v11 = vshll.u32 %v1570_v31, 23 }
 0x180   :  { %v1572_v28 = vor.u32 4788187, %v1571_v11  ;;  %v1575_v10 = vcvt.s32.f32 %v1568_v30 }
 0x182   :  { %v1573_v21 = vand.u32 2147483647, %v1572_v28 }
 0x184   :  { %v1576_v16 = vmul.f32 %v1575_v10, %v1573_v21 }
 0x186   :  { %v1577_v39 = vxor.u32 2147483648, %v1576_v16 }
 0x188   :  { %v1578_v18 = vsel %vm1495_vm11, %v1577_v39, %v1576_v16 }
 0x189   :  { %v1671_v43 = vpop.eup %1670  ;;  %v1581_v20 = vsel %vm2333_vm12, %v2157_v22, %v1578_v18 }
 0x18a   :  { %v1673_v44 = vpop.eup %1672  ;;  %1674 = vcosq.f32 %v1581_v20  ;;  %v1489_v46 = vxor.u32 2147483648, %v1671_v43 }
 0x18b   :  { %1676 = vsinq.f32 %v1581_v20  ;;  %v1486_v50 = vxor.u32 2147483648, %v1673_v44 }
 0x18c   :  { %v1490_v29 = vsel %vm1488_vm13, %v1489_v46, %v1673_v44 }
 0x18d   :  { %v1487_v14 = vsel %vm1485_vm14, %v1671_v43, %v1486_v50 }
 0x18e   :  { %v1491_v24 = vsel %vm1484_vm15, %v1487_v14, %v1490_v29 }
 0x18f   :  { %v1492_v27 = vsel %vm1481_vm0, nan, %v1491_v24 }
 0x190   :  { %1599 = vst [vmem:[#allocation8 + $0x10] sm:$0xff] %v1492_v27 }
 0x197   :  { %v1675_v33 = vpop.eup %1674 }
 0x198   :  { %v1677_v8 = vpop.eup %1676  ;;  %v1593_v53 = vxor.u32 2147483648, %v1675_v33 }
 0x199   :  { %v1590_v54 = vxor.u32 2147483648, %v1677_v8 }
 0x19a   :  { %v1594_v45 = vsel %vm1592_vm1, %v1593_v53, %v1677_v8 }
 0x19b   :  { %v1591_v56 = vsel %vm1589_vm2, %v1675_v33, %v1590_v54 }
 0x19c   :  { %v1595_v38 = vsel %vm1588_vm3, %v1591_v56, %v1594_v45 }
 0x19d   :  { %v1596_v35 = vsel %vm1585_vm4, nan, %v1595_v38 }
 0x19e   :  { %1600 = vst [vmem:[#allocation8 + $0x18] sm:$0xff] %v1596_v35 }
 0x19f   :  { %1749 = shalt.err (!%p1746_p5)
}
 0x1a0   :  { %1610 = dma.vmem_to_hbm [thread:$0]  %s1608_s2, 512, %s2350_s3, [#allocation4]  }
 0x1a1   :  { %1762 = dma.done.wait [#allocation4], 512  }
 0x1a2   :  { %1763 = vsyncadd [#allocation4], 4294966784 }
 0x1a3   :  { %1614 = vsyncpa [#allocation3], 1 }
 0x1a4   :  { %1615 = vsyncpa [#allocation6], 1 }
 0x1a5   :  { %1616 = vsyncpa [#allocation4], 1 }

</bundles_post_ra>
